<compile_context>
chip_gen: v6e
topology: v6e:2x2x1
jax: 0.10.0
libtpu: 0.0.40
codegen_flags: <defaults>
</compile_context>

<pallas_src>
import functools

import jax
import jax.numpy as jnp
from jax import lax
from jax.experimental import pallas as pl
from jax.experimental.pallas import tpu as pltpu

EPS = 1e-5  # BatchNorm2d default eps


def _round_up(x, m):
    return (x + m - 1) // m * m


# ----------------------------------------------------------------------------
# Pass 1: conv (im2col matmul, bf16 operands -> f32 accumulate) + per-tile
# partial BatchNorm statistics (sum, sum of squares).
# ----------------------------------------------------------------------------
def conv_stats_kernel(p_ref, w_ref, y_ref, s_ref, *, m_total, tm, cp):
    # p_ref: (TM, K) bf16 patches   w_ref: (K, CP) bf16 weights
    # y_ref: (TM, CP) bf16 conv out s_ref: (8, CP) f32 partial stats
    i = pl.program_id(0)

    y = jnp.dot(p_ref[...], w_ref[...], preferred_element_type=jnp.float32)
    # Store activations in bf16 (halves the biggest HBM stream).  Stats are
    # computed from the f32 MXU accumulator *before* the downcast.
    y_ref[...] = y.astype(y_ref.dtype)

    # Mask rows past the real M: the last (possibly ragged) tile reads
    # undefined out-of-bounds data which must not reach the BN statistics.
    row = lax.broadcasted_iota(jnp.int32, (tm, 1), 0)
    ym = jnp.where(row < (m_total - i * tm), y, 0.0)

    srow = jnp.sum(ym, axis=0, keepdims=True)        # (1, CP)
    qrow = jnp.sum(ym * ym, axis=0, keepdims=True)   # (1, CP)
    # One full, unmasked (8, CP) store: row 0 = sum, row 1 = sum of squares,
    # rows 2..7 = 0 (no stale/uninitialized bytes flushed to HBM).
    rid = lax.broadcasted_iota(jnp.int32, (8, cp), 0)
    s_ref[...] = jnp.where(rid == 0, srow, 0.0) + jnp.where(rid == 1, qrow, 0.0)


# ----------------------------------------------------------------------------
# Pass 2: fused BN apply (scale/shift) + ReLU + MaxPool2d(3, 2, 1).
# ----------------------------------------------------------------------------
def bn_relu_pool_kernel(y_ref, scale_ref, shift_ref, o_ref, ws_ref, *,
                        oh, ow, poh, pow_, cp):
    # y_ref: (OH*OW, CP) bf16 conv activations of one image
    # ws_ref: (1, OH+2, OW+2, CP) f32 scratch with a 1-element halo
    y = y_ref[...].astype(jnp.float32).reshape(1, oh, ow, cp)
    scale = scale_ref[...].reshape(1, 1, 1, cp)
    shift = shift_ref[...].reshape(1, 1, 1, cp)
    r = jnp.maximum(y * scale + shift, 0.0)          # BN affine + ReLU, f32

    # Zero only the 1-element border strips (post-ReLU values are >= 0, so a
    # zero border is equivalent to -inf padding for the max).  The interior is
    # fully overwritten below, so no full-scratch zeroing is needed.
    ws_ref[:, 0:1, :, :] = jnp.zeros((1, 1, ow + 2, cp), jnp.float32)
    ws_ref[:, oh + 1:oh + 2, :, :] = jnp.zeros((1, 1, ow + 2, cp), jnp.float32)
    ws_ref[:, :, 0:1, :] = jnp.zeros((1, oh + 2, 1, cp), jnp.float32)
    ws_ref[:, :, ow + 1:ow + 2, :] = jnp.zeros((1, oh + 2, 1, cp), jnp.float32)
    ws_ref[:, 1:1 + oh, 1:1 + ow, :] = r

    # Stage 1: 3-tap max along W at full resolution (3 offset reads, unstrided).
    wmax = jnp.maximum(
        jnp.maximum(ws_ref[:, 1:1 + oh, 0:ow, :],
                    ws_ref[:, 1:1 + oh, 1:1 + ow, :]),
        ws_ref[:, 1:1 + oh, 2:2 + ow, :])
    ws_ref[:, 1:1 + oh, 1:1 + ow, :] = wmax

    # Stage 2: stride-2 W subsample fused with 3-tap max along H (3 strided
    # reads instead of the previous 9 doubly-strided slabs).
    m = jnp.maximum(
        jnp.maximum(ws_ref[:, pl.ds(0, poh, 2), pl.ds(1, pow_, 2), :],
                    ws_ref[:, pl.ds(1, poh, 2), pl.ds(1, pow_, 2), :]),
        ws_ref[:, pl.ds(2, poh, 2), pl.ds(1, pow_, 2), :])
    o_ref[...] = m                                   # lane-dense (CP=128) store


# ----------------------------------------------------------------------------
# Wrapper
# ----------------------------------------------------------------------------
def dnet_forward(x_nchw, conv_w, gamma, beta):
    N, Cin, H, W = x_nchw.shape
    Cout, _, KH, KW = conv_w.shape
    stride, pad = 2, 3
    OH = (H + 2 * pad - KH) // stride + 1
    OW = (W + 2 * pad - KW) // stride + 1
    POH = (OH + 2 - 3) // 2 + 1
    POW = (OW + 2 - 3) // 2 + 1

    K = Cin * KH * KW                   # 147 -- kept UNPADDED (full-extent block)
    CP = _round_up(Cout, 128)           # lane-dense 128-wide output channels
    M = N * OH * OW                     # note: OH*OW must be a multiple of 8 for N > 1

    # ---- im2col glue: cast to bf16 BEFORE the 49x amplification, no K/M pad ----
    xe = x_nchw.astype(jnp.bfloat16)
    xp = jnp.pad(xe, ((0, 0), (0, 0), (pad, pad), (pad, pad)))
    cols = []
    for kh in range(KH):
        for kw in range(KW):
            cols.append(xp[:, :, kh:kh + stride * (OH - 1) + 1:stride,
                                 kw:kw + stride * (OW - 1) + 1:stride])
    pat = jnp.stack(cols, axis=2)                       # (N, Cin, KH*KW, OH, OW) bf16
    pat = pat.transpose(0, 3, 4, 1, 2).reshape(M, K)    # (M, K) bf16, K order (ci, kh, kw)
    w2 = conv_w.astype(jnp.bfloat16).reshape(Cout, K).T  # (K, Cout) bf16
    w2 = jnp.pad(w2, ((0, 0), (0, CP - Cout)))          # channel pad only (tiny)

    # Memory-bound: big M tiles amortize pipeline overhead; ~2.5 MiB VMEM total.
    TM = min(2048, _round_up(M, 8))
    ntiles = pl.cdiv(M, TM)

    flops = 2 * M * K * CP
    bytes_accessed = M * K * 2 + K * CP * 2 + M * CP * 2 + ntiles * 8 * CP * 4

    conv_out, stats = pl.pallas_call(
        functools.partial(conv_stats_kernel, m_total=M, tm=TM, cp=CP),
        out_shape=(jax.ShapeDtypeStruct((M, CP), jnp.bfloat16),
                   jax.ShapeDtypeStruct((ntiles * 8, CP), jnp.float32)),
        grid=(ntiles,),
        in_specs=[
            pl.BlockSpec((TM, K), lambda i: (i, 0)),    # K = full extent, no dead pad
            pl.BlockSpec((K, CP), lambda i: (0, 0)),
        ],
        out_specs=(
            pl.BlockSpec((TM, CP), lambda i: (i, 0)),
            pl.BlockSpec((8, CP), lambda i: (i, 0)),
        ),
        compiler_params=pltpu.CompilerParams(
            dimension_semantics=("parallel",)),
        cost_estimate=pl.CostEstimate(
            flops=flops, transcendentals=0, bytes_accessed=bytes_accessed),
    )(pat, w2)

    # ---- batch statistics -> per-channel scale / shift (tiny f32 glue) ----
    # Variance via E[y^2] - mean^2 in f32 (clamped at 0); fine at these
    # magnitudes -- switch to a Chan-style combine if BN precision ever matters.
    stats = stats.reshape(ntiles, 8, CP)
    ssum = jnp.sum(stats[:, 0, :], axis=0)
    ssq = jnp.sum(stats[:, 1, :], axis=0)
    mean = ssum / M                                       # divide by REAL rows
    var = jnp.maximum(ssq / M - mean * mean, 0.0)
    gamma_p = jnp.pad(gamma.astype(jnp.float32), (0, CP - Cout))
    beta_p = jnp.pad(beta.astype(jnp.float32), (0, CP - Cout))
    scale = gamma_p * lax.rsqrt(var + EPS)
    shift = beta_p - mean * scale

    # Pass 2 consumes conv_out directly as (M, CP): one image is OH*OW
    # contiguous rows, so there is NO XLA slice/reshape copy between passes.
    pooled = pl.pallas_call(
        functools.partial(bn_relu_pool_kernel,
                          oh=OH, ow=OW, poh=POH, pow_=POW, cp=CP),
        out_shape=jax.ShapeDtypeStruct((N, POH, POW, CP), jnp.float32),
        grid=(N,),
        in_specs=[
            pl.BlockSpec((OH * OW, CP), lambda n: (n, 0)),
            pl.BlockSpec((1, CP), lambda n: (0, 0)),
            pl.BlockSpec((1, CP), lambda n: (0, 0)),
        ],
        out_specs=pl.BlockSpec((1, POH, POW, CP), lambda n: (n, 0, 0, 0)),
        scratch_shapes=[pltpu.VMEM((1, OH + 2, OW + 2, CP), jnp.float32)],
        compiler_params=pltpu.CompilerParams(
            dimension_semantics=("parallel",),
            # Above v5e's 16 MiB default scoped limit (whole-image blocks at
            # large resolutions), comfortably below every chip's physical VMEM.
            vmem_limit_bytes=48 * 1024 * 1024),
    )(conv_out, scale.reshape(1, CP), shift.reshape(1, CP))

    # drop channel padding, back to NCHW
    return pooled[..., :Cout].transpose(0, 3, 1, 2)


# ----------------------------------------------------------------------------
# Reference: bf16 conv operands / f32 accumulation, f32 BN math -- the same
# semantics as the PyTorch module up to the kernel's MXU input precision.
# The kernel additionally stores conv activations in bf16, which bounds the
# per-element error by <= 2^-8 of the pre-BN value; the tolerance below
# (5e-3 rel+abs) provably covers that.
# ----------------------------------------------------------------------------
def dnet_reference(x, conv_w, gamma, beta):
    xe = x.astype(jnp.bfloat16).astype(jnp.float32)
    we = conv_w.astype(jnp.bfloat16).astype(jnp.float32)
    c = lax.conv_general_dilated(
        xe, we, window_strides=(2, 2), padding=((3, 3), (3, 3)),
        dimension_numbers=("NCHW", "OIHW", "NCHW"))
    mean = c.mean(axis=(0, 2, 3), keepdims=True)
    var = jnp.square(c - mean).mean(axis=(0, 2, 3), keepdims=True)
    bn = (c - mean) * lax.rsqrt(var + EPS)
    bn = bn * gamma.reshape(1, -1, 1, 1) + beta.reshape(1, -1, 1, 1)
    r = jnp.maximum(bn, 0.0)
    return lax.reduce_window(
        r, -jnp.inf, lax.max,
        window_dimensions=(1, 1, 3, 3), window_strides=(1, 1, 2, 2),
        padding=((0, 0), (0, 0), (1, 1), (1, 1)))


if __name__ == "__main__":
    key = jax.random.PRNGKey(0)
    k1, k2 = jax.random.split(key)

    # Shapes implied by dnet.__init__ (Cin=3, Cout=96), small test size.
    x = jax.random.normal(k1, (2, 3, 16, 16), dtype=jnp.float32)          # NCHW
    conv_w = 0.05 * jax.random.normal(k2, (96, 3, 7, 7), dtype=jnp.float32)
    gamma = jnp.ones((96,), jnp.float32)   # BatchNorm2d default weight
    beta = jnp.zeros((96,), jnp.float32)   # BatchNorm2d default bias

    out = dnet_forward(x, conv_w, gamma, beta)
    jax.block_until_ready(out)
    assert out.shape == (2, 96, 4, 4), out.shape

    ref = dnet_reference(x, conv_w, gamma, beta)
    max_err = float(jnp.max(jnp.abs(out - ref)))
    # 5e-3 covers the bf16 storage of the conv activations (<= 0.5 ulp of the
    # pre-BN value, i.e. <= ~2^-8 * |normalized value| after BN).
    assert jnp.allclose(out, ref, rtol=5e-3, atol=5e-3), max_err

    print("KERNEL_OK")
</pallas_src>

<mosaic_0001>
module attributes {stable_mosaic.version = 11 : i64} {
  func.func @conv_stats_kernel(%arg0: i32, %arg1: memref<128x147xbf16, #tpu.memory_space<vmem>>, %arg2: memref<147x128xbf16, #tpu.memory_space<vmem>>, %arg3: memref<128x128xbf16, #tpu.memory_space<vmem>>, %arg4: memref<8x128xf32, #tpu.memory_space<vmem>>) attributes {dimension_semantics = [#tpu.dimension_semantics<parallel>], iteration_bounds = array<i64: 1>, scalar_prefetch = 0 : i64, scratch_operands = 0 : i64, tpu.core_type = #tpu.core_type<tc>, window_params = [{transform_indices = @transform_0, window_bounds = array<i64: 128, 147>}, {pipeline_mode = #tpu.pipeline_mode<synchronous>, transform_indices = @transform_1, window_bounds = array<i64: 147, 128>}, {transform_indices = @transform_2, window_bounds = array<i64: 128, 128>}, {transform_indices = @transform_3, window_bounds = array<i64: 8, 128>}]} {
    %c0 = arith.constant 0 : index
    %c0_0 = arith.constant 0 : index
    %0 = vector.load %arg1[%c0, %c0_0] : memref<128x147xbf16, #tpu.memory_space<vmem>>, vector<128x147xbf16>
    %c0_1 = arith.constant 0 : index
    %c0_2 = arith.constant 0 : index
    %1 = vector.load %arg2[%c0_1, %c0_2] : memref<147x128xbf16, #tpu.memory_space<vmem>>, vector<147x128xbf16>
    %cst = arith.constant dense<0.000000e+00> : vector<128x128xf32>
    %2 = tpu.matmul %0, %1, %cst {dimension_numbers = #tpu.dot_dimension_numbers<[1], [0], [0], [1], [0, 0, 1, 1], [], []>} : vector<128x147xbf16>, vector<147x128xbf16>, vector<128x128xf32> -> vector<128x128xf32>
    %3 = arith.truncf %2 : vector<128x128xf32> to vector<128x128xbf16>
    %c0_3 = arith.constant 0 : index
    %c0_4 = arith.constant 0 : index
    %4 = vector.load %arg3[%c0_3, %c0_4] : memref<128x128xbf16, #tpu.memory_space<vmem>>, vector<128x128xbf16>
    tpu.vector_store %arg3[%c0_3, %c0_4], %3 {strides = array<i32>} : memref<128x128xbf16, #tpu.memory_space<vmem>>, vector<128x128xbf16>,
    %5 = tpu.iota {dimensions = array<i32: 0>} : vector<128x1xi32>
    %c128_i32 = arith.constant 128 : i32
    %6 = arith.muli %arg0, %c128_i32 : i32
    %c128_i32_5 = arith.constant 128 : i32
    %7 = arith.subi %c128_i32_5, %6 : i32
    %8 = vector.broadcast %7 : i32 to vector<128x1xi32>
    %9 = arith.cmpi slt, %5, %8 : vector<128x1xi32>
    %cst_6 = arith.constant 0.000000e+00 : f32
    %10 = vector.shape_cast %9 : vector<128x1xi1> to vector<128x1xi1>
    %11 = vector.broadcast %10 : vector<128x1xi1> to vector<128x128xi1>
    %12 = vector.broadcast %cst_6 : f32 to vector<128x128xf32>
    %13 = arith.select %11, %2, %12 : vector<128x128xi1>, vector<128x128xf32>
    %cst_7 = arith.constant dense<0.000000e+00> : vector<128xf32>
    %14 = vector.multi_reduction <add>, %13, %cst_7 [0] : vector<128x128xf32> to vector<128xf32>
    %15 = vector.shape_cast %14 : vector<128xf32> to vector<1x128xf32>
    %16 = arith.mulf %13, %13 : vector<128x128xf32>
    %cst_8 = arith.constant dense<0.000000e+00> : vector<128xf32>
    %17 = vector.multi_reduction <add>, %16, %cst_8 [0] : vector<128x128xf32> to vector<128xf32>
    %18 = vector.shape_cast %17 : vector<128xf32> to vector<1x128xf32>
    %19 = tpu.iota {dimensions = array<i32: 0>} : vector<8x128xi32>
    %c0_i32 = arith.constant 0 : i32
    %20 = vector.broadcast %c0_i32 : i32 to vector<8x128xi32>
    %21 = arith.cmpi eq, %19, %20 : vector<8x128xi32>
    %cst_9 = arith.constant 0.000000e+00 : f32
    %22 = vector.shape_cast %15 : vector<1x128xf32> to vector<1x128xf32>
    %23 = vector.broadcast %22 : vector<1x128xf32> to vector<8x128xf32>
    %24 = vector.broadcast %cst_9 : f32 to vector<8x128xf32>
    %25 = arith.select %21, %23, %24 : vector<8x128xi1>, vector<8x128xf32>
    %c1_i32 = arith.constant 1 : i32
    %26 = vector.broadcast %c1_i32 : i32 to vector<8x128xi32>
    %27 = arith.cmpi eq, %19, %26 : vector<8x128xi32>
    %cst_10 = arith.constant 0.000000e+00 : f32
    %28 = vector.shape_cast %18 : vector<1x128xf32> to vector<1x128xf32>
    %29 = vector.broadcast %28 : vector<1x128xf32> to vector<8x128xf32>
    %30 = vector.broadcast %cst_10 : f32 to vector<8x128xf32>
    %31 = arith.select %27, %29, %30 : vector<8x128xi1>, vector<8x128xf32>
    %32 = arith.addf %25, %31 : vector<8x128xf32>
    %c0_11 = arith.constant 0 : index
    %c0_12 = arith.constant 0 : index
    %33 = vector.load %arg4[%c0_11, %c0_12] : memref<8x128xf32, #tpu.memory_space<vmem>>, vector<8x128xf32>
    tpu.vector_store %arg4[%c0_11, %c0_12], %32 {strides = array<i32>} : memref<8x128xf32, #tpu.memory_space<vmem>>, vector<8x128xf32>,
    return
  }
  func.func @transform_0(%arg0: i32) -> (i32, i32) {
    %c0_i32 = arith.constant 0 : i32
    %c0_i32_0 = arith.constant 0 : i32
    return %arg0, %c0_i32 : i32, i32
  }
  func.func @transform_1(%arg0: i32) -> (i32, i32) {
    %c0_i32 = arith.constant 0 : i32
    %c0_i32_0 = arith.constant 0 : i32
    %c0_i32_1 = arith.constant 0 : i32
    return %c0_i32, %c0_i32_0 : i32, i32
  }
  func.func @transform_2(%arg0: i32) -> (i32, i32) {
    %c0_i32 = arith.constant 0 : i32
    %c0_i32_0 = arith.constant 0 : i32
    return %arg0, %c0_i32 : i32, i32
  }
  func.func @transform_3(%arg0: i32) -> (i32, i32) {
    %c0_i32 = arith.constant 0 : i32
    %c0_i32_0 = arith.constant 0 : i32
    return %arg0, %c0_i32 : i32, i32
  }
}

</mosaic_0001>

<bundles_post_ra>
// kernel: tpu_custom_call.1
= control target key start
LH: loop header
LB: loop body
LE: loop exit
PB: predicated region body
PF: predicated region fallthrough
CT: control target
= control target key end

     0   :  { %9 = vsyncpa [#allocation3], 0  ;;  %v784_v1 = vmov 0   ;;  %vm180_vm0 = vcmask 154624   ;;  %s932_s0 = inlined_call_operand.vmem [shape: bf16[128,147], index: 0, kind: input, shape index: {}]   ;;  %s933_s1 = inlined_call_operand.vmem [shape: bf16[147,128], index: 1, kind: input, shape index: {}]   ;;  %s934_s2 = inlined_call_operand.hbm [shape: bf16[128,128], index: 2, kind: output, shape index: {0}]   ;;  %s935_s3 = inlined_call_operand.hbm [shape: f32[8,128], index: 3, kind: output, shape index: {1}]  }
   0x1   :  { %v706_v0 = vld [vmem:[%s933_s1 + $0x38] sm:$0xff]   ;;  %212 = vmatprep.subr.bf16.mxu0 %v784_v1  ;;  %680 = vmatprep.subr.bf16.mxu1 %v784_v1  ;;  %v707_v2 = vld [vmem:[%s933_s1 + $0x30] sm:$0xff]   ;;  %v708_v3 = vld [vmem:[%s933_s1 + $0x28] sm:$0xff]  }
   0x2   :  { %213 = vmatpush1.bf16.msra.mxu0 %v706_v0  ;;  %690 = vmatpush1.bf16.msra.mxu1 %v706_v0  ;;  %v709_v4 = vld [vmem:[%s933_s1 + $0x20] sm:$0xff]   ;;  %v710_v7 = vld [vmem:[%s933_s1 + $0x18] sm:$0xff]   ;;  %v711_v8 = vld [vmem:[%s933_s1 + $0x10] sm:$0xff]  }
   0x3   :  { %214 = vmatprep.subr.bf16.mxu0 %v784_v1  ;;  %681 = vmatprep.subr.bf16.mxu1 %v784_v1  ;;  %v718_v5 = vld [vmem:[%s932_s0 + $0x4] ss:$8 sps:$4 sm:$0xff]  }
   0x4   :  { %593 = vmatprep.mubr.msk.bf16.mxu0 %vm180_vm0, %v718_v5  ;;  %v724_v6 = vld [vmem:[%s932_s0 + $0x44] ss:$8 sps:$4 sm:$0xff]  }
   0x5   :  { %597 = vmatprep.mubr.msk.bf16.mxu1 %vm180_vm0, %v724_v6 }
   0x6   :  { %215 = vmatpush1.bf16.msra.mxu0 %v707_v2  ;;  %691 = vmatpush1.bf16.msra.mxu1 %v707_v2 }
   0x7   :  { %216 = vmatprep.subr.bf16.mxu0 %v784_v1  ;;  %682 = vmatprep.subr.bf16.mxu1 %v784_v1 }
   0xa   :  { %217 = vmatpush1.bf16.msra.mxu0 %v708_v3  ;;  %692 = vmatpush1.bf16.msra.mxu1 %v708_v3 }
   0xb   :  { %218 = vmatprep.subr.bf16.mxu0 %v784_v1  ;;  %683 = vmatprep.subr.bf16.mxu1 %v784_v1 }
   0xe   :  { %219 = vmatpush1.bf16.msra.mxu0 %v709_v4  ;;  %693 = vmatpush1.bf16.msra.mxu1 %v709_v4 }
   0xf   :  { %220 = vmatprep.subr.bf16.mxu0 %v784_v1  ;;  %684 = vmatprep.subr.bf16.mxu1 %v784_v1 }
  0x12   :  { %221 = vmatpush1.bf16.msra.mxu0 %v710_v7  ;;  %694 = vmatpush1.bf16.msra.mxu1 %v710_v7 }
  0x13   :  { %222 = vmatprep.subr.bf16.mxu0 %v784_v1  ;;  %685 = vmatprep.subr.bf16.mxu1 %v784_v1 }
  0x14   :  { %10 = vsyncpa [#allocation5], 0  ;;  %vm205_vm1 = vcmask 1040384   ;;  %v712_v9 = vld [vmem:[%s933_s1 + $0x8] sm:$0xff]   ;;  %vm206_vm2 = vcmask 1041408   ;;  %v785_v10 = vmov 65535  }
  0x15   :  { %v207_v11 = vsel %vm205_vm1, 4294967295, %v785_v10  ;;  %v713_v12 = vld [vmem:[%s933_s1] sm:$0xff]   ;;  %v714_v13 = vld [vmem:[%s933_s1 + $0x48] ss:$0 sps:$4 sm:$0x33]  }
  0x16   :  { %223 = vmatpush1.bf16.msra.mxu0 %v711_v8  ;;  %695 = vmatpush1.bf16.msra.mxu1 %v711_v8  ;;  %v208_v14 = vsel %vm206_vm2, %v207_v11, 0  ;;  %v715_v16 = vld [vmem:[%s933_s1 + $0x40] sm:$0xff]   ;;  %v719_v19 = vld [vmem:[%s932_s0 + $0x14] ss:$8 sps:$4 sm:$0xff]   ;;  %v721_v21 = vld [vmem:[%s932_s0 + $0x10] ss:$8 sps:$4 sm:$0xff]  }
  0x17   :  { %224 = vmatprep.subr.bf16.mxu0 %v784_v1  ;;  %686 = vmatprep.subr.bf16.mxu1 %v784_v1  ;;  %v210_v15 = vand.u32 %v714_v13, %v208_v14  ;;  %v716_v17 = vld [vmem:[%s932_s0] ss:$8 sps:$4 sm:$0xff]   ;;  %v728_v20 = vld [vmem:[%s932_s0 + $0x54] ss:$8 sps:$4 sm:$0xff]   ;;  %v730_v22 = vld [vmem:[%s932_s0 + $0x50] ss:$8 sps:$4 sm:$0xff]  }
  0x18   :  { %v722_v18 = vld [vmem:[%s932_s0 + $0x40] ss:$8 sps:$4 sm:$0xff]   ;;  %v725_v23 = vld [vmem:[%s932_s0 + $0x24] ss:$8 sps:$4 sm:$0xff]   ;;  %v731_v27 = vld [vmem:[%s932_s0 + $0x34] ss:$8 sps:$4 sm:$0xff]  }
  0x19   :  { %v734_v24 = vld [vmem:[%s932_s0 + $0x64] ss:$8 sps:$4 sm:$0xff]   ;;  %v727_v25 = vld [vmem:[%s932_s0 + $0x20] ss:$8 sps:$4 sm:$0xff]   ;;  %v737_v28 = vld [vmem:[%s932_s0 + $0x74] ss:$8 sps:$4 sm:$0xff]  }
  0x1a   :  { %225 = vmatpush1.bf16.msra.mxu0 %v712_v9  ;;  %696 = vmatpush1.bf16.msra.mxu1 %v712_v9  ;;  %v736_v26 = vld [vmem:[%s932_s0 + $0x60] ss:$8 sps:$4 sm:$0xff]   ;;  %v733_v29 = vld [vmem:[%s932_s0 + $0x30] ss:$8 sps:$4 sm:$0xff]  }
  0x1b   :  { %226 = vmatprep.subr.bf16.mxu0 %v784_v1  ;;  %687 = vmatprep.subr.bf16.mxu1 %v784_v1  ;;  %v739_v30 = vld [vmem:[%s932_s0 + $0x70] ss:$8 sps:$4 sm:$0xff]   ;;  %s786_s0 = smov [#allocation2]  }
  0x1c   :  { %s542_s9 = sshll.u32 %s786_s0, 4  ;;  %s543_s9 = int_to_ptr.vmem [resolvable:$true] %s542_s9 }
  0x1d   :  { %s740_s10 = scalar_lea.vmem %s543_s9, 1024  ;;  %p745_p1 = scmp.lt.s32.totalorder %s543_s9, %s543_s9 }
  0x1e   :  { %227 = vmatpush1.bf16.msra.mxu0 %v713_v12  ;;  %697 = vmatpush1.bf16.msra.mxu1 %v713_v12  ;;  %p741_p0 = scmp.ne.s32.totalorder %s543_s9, %s740_s10  ;;  %p746_p2 = scmp.lt.s32.totalorder %s740_s10, %s740_s10 }
  0x1f   :  { %240 = vmatprep.subr.bf16.mxu0 %v784_v1  ;;  %688 = vmatprep.subr.bf16.mxu1 %v784_v1 }
  0x20   :  { %p747_p3 = por %p746_p2, %p745_p1 }
  0x22   :  { %241 = vmatpush2.bf16.msra.mxu0 %v210_v15  ;;  %698 = vmatpush2.bf16.msra.mxu1 %v210_v15  ;;  %p748_p4 = pnand %p747_p3, %p741_p0 }
  0x23   :  { %242 = vmatprep.subr.bf16.mxu0 %v784_v1  ;;  %689 = vmatprep.subr.bf16.mxu1 %v784_v1 }
  0x26   :  { %243 = vmatpush2.bf16.msra.mxu0 %v715_v16  ;;  %699 = vmatpush2.bf16.msra.mxu1 %v715_v16 }
  0x29   :  { %245 = vmatmul.mubr.bf16.vlgmr.msra.gmra.mxu0 %v716_v17  ;;  %277 = vmatmul.mubr.bf16.vlgmr.msra.gmra.mxu1 %v722_v18 }
  0x2a   :  { %594 = vmatprep.mubr.msk.bf16.mxu0 %vm180_vm0, %v719_v19  ;;  %598 = vmatprep.mubr.msk.bf16.mxu1 %vm180_vm0, %v728_v20 }
  0x31   :  { %253 = vmatmul.mubr.bf16.gmra.mxu0 %v721_v21  ;;  %285 = vmatmul.mubr.bf16.gmra.mxu1 %v730_v22 }
  0x32   :  { %595 = vmatprep.mubr.msk.bf16.mxu0 %vm180_vm0, %v725_v23  ;;  %599 = vmatprep.mubr.msk.bf16.mxu1 %vm180_vm0, %v734_v24 }
  0x39   :  { %261 = vmatmul.mubr.bf16.gmra.mxu0 %v727_v25  ;;  %293 = vmatmul.mubr.bf16.gmra.mxu1 %v736_v26 }
  0x3a   :  { %596 = vmatprep.mubr.msk.bf16.mxu0 %vm180_vm0, %v731_v27  ;;  %600 = vmatprep.mubr.msk.bf16.mxu1 %vm180_vm0, %v737_v28 }
  0x41   :  { %269 = vmatmul.mubr.bf16.gmra.mxu0 %v733_v29  ;;  %301 = vmatmul.mubr.bf16.gmra.mxu1 %v739_v30 }
  0xe9   :  { %v246_v31 = vpop.f32.mrf.mxu0  ;;  %v896_v32 = vpop.f32.mrf.mxu1 }
  0xea   :  { %v494_v52 = vmul.f32 %v246_v31, %v246_v31  ;;  %v502_v28 = vmul.f32 %v896_v32, %v896_v32 }
  0xeb   :  { %v248_v33 = vpop.f32.mrf.mxu0  ;;  %v280_v34 = vpop.f32.mrf.mxu1 }
  0xed   :  { %v249_v35 = vpop.f32.mrf.mxu0  ;;  %v898_v36 = vpop.f32.mrf.mxu1 }
  0xee   :  { %v636_v37 = vpack.c.bf16 %v249_v35, %v246_v31  ;;  %v656_v38 = vpack.c.bf16 %v898_v36, %v896_v32  ;;  %v495_v49 = vmul.f32 %v249_v35, %v249_v35  ;;  %v473_v56 = vadd.f32 %v249_v35, %v246_v31 }
  0xef   :  { %v251_v39 = vpop.f32.mrf.mxu0  ;;  %v283_v40 = vpop.f32.mrf.mxu1 }
  0xf0   :  { %637 = vst [vmem:[#allocation2] sm:$0xff] %v636_v37   ;;  %676 = vst [vmem:[#allocation2 + $0x20] sm:$0xff] %v656_v38   ;;  %v510_v57 = vadd.f32 %v495_v49, %v494_v52 }
  0xf1   :  { %v254_v41 = vpop.f32.mrf.mxu0  ;;  %v902_v42 = vpop.f32.mrf.mxu1 }
  0xf2   :  { %v496_v53 = vmul.f32 %v254_v41, %v254_v41  ;;  %v474_v61 = vadd.f32 %v473_v56, %v254_v41 }
  0xf3   :  { %v256_v43 = vpop.f32.mrf.mxu0  ;;  %v288_v44 = vpop.f32.mrf.mxu1 }
  0xf4   :  { %v511_v62 = vadd.f32 %v510_v57, %v496_v53 }
  0xf5   :  { %v257_v45 = vpop.f32.mrf.mxu0  ;;  %v904_v46 = vpop.f32.mrf.mxu1 }
  0xf6   :  { %v641_v47 = vpack.c.bf16 %v257_v45, %v254_v41  ;;  %v661_v48 = vpack.c.bf16 %v904_v46, %v902_v42  ;;  %v497_v58 = vmul.f32 %v257_v45, %v257_v45  ;;  %v475_v2 = vadd.f32 %v474_v61, %v257_v45 }
  0xf7   :  { %v259_v50 = vpop.f32.mrf.mxu0  ;;  %v291_v51 = vpop.f32.mrf.mxu1 }
  0xf8   :  { %673 = vst [vmem:[#allocation2 + $0x8] sm:$0xff] %v641_v47   ;;  %677 = vst [vmem:[#allocation2 + $0x28] sm:$0xff] %v661_v48   ;;  %v512_v5 = vadd.f32 %v511_v62, %v497_v58 }
  0xf9   :  { %v262_v54 = vpop.f32.mrf.mxu0  ;;  %v908_v55 = vpop.f32.mrf.mxu1 }
  0xfa   :  { %v498_v63 = vmul.f32 %v262_v54, %v262_v54  ;;  %v476_v9 = vadd.f32 %v475_v2, %v262_v54 }
  0xfb   :  { %v264_v59 = vpop.f32.mrf.mxu0  ;;  %v296_v60 = vpop.f32.mrf.mxu1 }
  0xfc   :  { %v513_v10 = vadd.f32 %v512_v5, %v498_v63 }
  0xfd   :  { %v265_v0 = vpop.f32.mrf.mxu0  ;;  %v297_v1 = vpop.f32.mrf.mxu1 }
  0xfe   :  { %v646_v3 = vpack.c.bf16 %v265_v0, %v262_v54  ;;  %v666_v4 = vpack.c.bf16 %v297_v1, %v908_v55  ;;  %v499_v6 = vmul.f32 %v265_v0, %v265_v0  ;;  %v477_v13 = vadd.f32 %v476_v9, %v265_v0 }
  0xff   :  { %v267_v7 = vpop.f32.mrf.mxu0  ;;  %v299_v8 = vpop.f32.mrf.mxu1 }
 0x100   :  { %674 = vst [vmem:[#allocation2 + $0x10] sm:$0xff] %v646_v3   ;;  %678 = vst [vmem:[#allocation2 + $0x30] sm:$0xff] %v666_v4   ;;  %v514_v15 = vadd.f32 %v513_v10, %v499_v6 }
 0x101   :  { %v270_v11 = vpop.f32.mrf.mxu0  ;;  %v302_v12 = vpop.f32.mrf.mxu1 }
 0x102   :  { %v500_v14 = vmul.f32 %v270_v11, %v270_v11  ;;  %v478_v18 = vadd.f32 %v477_v13, %v270_v11 }
 0x103   :  { %v272_v16 = vpop.f32.mrf.mxu0  ;;  %v304_v17 = vpop.f32.mrf.mxu1 }
 0x104   :  { %v515_v19 = vadd.f32 %v514_v15, %v500_v14 }
 0x105   :  { %v273_v20 = vpop.f32.mrf.mxu0  ;;  %v305_v21 = vpop.f32.mrf.mxu1 }
 0x106   :  { %v651_v22 = vpack.c.bf16 %v273_v20, %v270_v11  ;;  %v479_v23 = vadd.f32 %v478_v18, %v273_v20  ;;  %v501_v24 = vmul.f32 %v273_v20, %v273_v20  ;;  %v671_v25 = vpack.c.bf16 %v305_v21, %v302_v12 }
 0x107   :  { %v275_v26 = vpop.f32.mrf.mxu0  ;;  %v307_v27 = vpop.f32.mrf.mxu1 }
 0x108   :  { %675 = vst [vmem:[#allocation2 + $0x18] sm:$0xff] %v651_v22   ;;  %v480_v29 = vadd.f32 %v479_v23, %v896_v32  ;;  %v516_v30 = vadd.f32 %v515_v19, %v501_v24  ;;  %679 = vst [vmem:[#allocation2 + $0x38] sm:$0xff] %v671_v25  }
 0x109   :  { %751 = shalt.err (!%p748_p4)
}
 0x10a   :  { %s787_s11 = smov 64   ;;  %s788_s12 = smov 4   ;;  %v503_v31 = vmul.f32 %v898_v36, %v898_v36  ;;  %v481_v32 = vadd.f32 %v480_v29, %v898_v36  ;;  %v517_v33 = vadd.f32 %v516_v30, %v502_v28  ;;  %v504_v34 = vmul.f32 %v902_v42, %v902_v42 }
 0x10b   :  { %548 = dma.vmem_to_hbm [thread:$0]  %s543_s9, 1024, %s934_s2, [#allocation3], %s787_s11, %s787_s11, %s788_s12   ;;  %v505_v38 = vmul.f32 %v904_v46, %v904_v46  ;;  %v506_v41 = vmul.f32 %v908_v55, %v908_v55  ;;  %v507_v45 = vmul.f32 %v297_v1, %v297_v1  ;;  %v508_v50 = vmul.f32 %v302_v12, %v302_v12 }
 0x10c   :  { %v518_v35 = vadd.f32 %v517_v33, %v503_v31  ;;  %v482_v37 = vadd.f32 %v481_v32, %v902_v42  ;;  %v509_v52 = vmul.f32 %v305_v21, %v305_v21  ;;  %v389_v57 = vlaneseq  ;;  %s789_s2 = smov [#allocation4]  }
 0x10d   :  { %s555_s15 = sshll.u32 %s789_s2, 4  ;;  %s556_s15 = int_to_ptr.vmem [resolvable:$true] %s555_s15 }
 0x10e   :  { %v483_v39 = vadd.f32 %v482_v37, %v904_v46  ;;  %v519_v40 = vadd.f32 %v518_v35, %v504_v34  ;;  %s760_s16 = scalar_lea.vmem %s556_s15, 128  ;;  %p765_p6 = scmp.lt.s32.totalorder %s556_s15, %s556_s15 }
 0x10f   :  { %p761_p5 = scmp.ne.s32.totalorder %s556_s15, %s760_s16  ;;  %p766_p7 = scmp.lt.s32.totalorder %s760_s16, %s760_s16 }
 0x110   :  { %v484_v43 = vadd.f32 %v483_v39, %v908_v55  ;;  %v520_v44 = vadd.f32 %v519_v40, %v505_v38  ;;  %v390_v55 = vshrl.u32 %v389_v57, 7 }
 0x111   :  { %p767_p8 = por %p766_p7, %p765_p6 }
 0x112   :  { %v485_v36 = vadd.f32 %v484_v43, %v297_v1  ;;  %v521_v47 = vadd.f32 %v520_v44, %v506_v41  ;;  %vm531_vm3 = vcmp.eq.s32.totalorder %v390_v55, 0  ;;  %vm533_vm4 = vcmp.eq.s32.totalorder %v390_v55, 1 }
 0x113   :  { %p768_p9 = pnand %p767_p8, %p761_p5 }
 0x114   :  { %v522_v48 = vadd.f32 %v521_v47, %v507_v45  ;;  %v486_v49 = vadd.f32 %v485_v36, %v302_v12 }
 0x116   :  { %v523_v51 = vadd.f32 %v522_v48, %v508_v50  ;;  %v487_v42 = vadd.f32 %v486_v49, %v305_v21 }
 0x118   :  { %v488_v53 = vrot.slane %v487_v42, 4  ;;  %v524_v54 = vadd.f32 %v523_v51, %v509_v52 }
 0x11a   :  { %v489_v56 = vadd.f32 %v488_v53, %v487_v42  ;;  %v525_v46 = vrot.slane %v524_v54, 4 }
 0x11c   :  { %v490_v58 = vrot.slane %v489_v56, 2  ;;  %v526_v59 = vadd.f32 %v525_v46, %v524_v54 }
 0x11e   :  { %v491_v60 = vadd.f32 %v490_v58, %v489_v56  ;;  %v527_v61 = vrot.slane %v526_v59, 2 }
 0x120   :  { %v492_v62 = vrot.slane %v491_v60, 1  ;;  %v528_v63 = vadd.f32 %v527_v61, %v526_v59 }
 0x122   :  { %v493_v0 = vadd.f32 %v492_v62, %v491_v60  ;;  %v529_v1 = vrot.slane %v528_v63, 1 }
 0x124   :  { %v530_v2 = vadd.f32 %v529_v1, %v528_v63  ;;  %v532_v3 = vsel %vm531_vm3, %v493_v0, 0.0 }
 0x126   :  { %v534_v4 = vsel %vm533_vm4, %v530_v2, 0.0 }
 0x127   :  { %v535_v5 = vadd.f32 %v534_v4, %v532_v3 }
 0x129   :  { %536 = vst [vmem:[#allocation4] sm:$0xff] %v535_v5 }
 0x12a   :  { %771 = shalt.err (!%p768_p9)
}
 0x12b   :  { %558 = dma.vmem_to_hbm [thread:$0]  %s556_s15, 128, %s935_s3, [#allocation5]  }
 0x12c   :  { %780 = dma.done.wait [#allocation3], 1024  }
 0x12d   :  { %781 = vsyncadd [#allocation3], 4294966272 }
 0x12e   :  { %782 = dma.done.wait [#allocation5], 128  }
 0x12f   :  { %783 = vsyncadd [#allocation5], 4294967168 }
 0x130   :  { %565 = vsyncpa [#allocation3], 1 }
 0x131   :  { %566 = vsyncpa [#allocation5], 1 }

</bundles_post_ra>
